<compile_context>
chip_gen: v7x
topology: tpu7x:2x2x1
jax: 0.10.0
libtpu: 0.0.40
codegen_flags: <defaults>
</compile_context>

<pallas_src>
import jax
import jax.numpy as jnp
from jax.experimental import pallas as pl
from jax.experimental.pallas import tpu as pltpu


# ----------------------------------------------------------------------------
# Kernels
# ----------------------------------------------------------------------------
def _rms_norm_kernel(x_ref, o_ref):
    """y = x / sqrt(mean(x^2, last axis)) for one (TR, T) row tile."""
    x = x_ref[...]
    xf = x.astype(jnp.float32)
    # Reduction over the full (lane) T axis kept inside the block -> single pass.
    ms = jnp.mean(xf * xf, axis=-1, keepdims=True)
    # One reciprocal per row (TR elements) instead of R*T divides.
    inv = 1.0 / jnp.sqrt(ms)
    o_ref[...] = (xf * inv).astype(o_ref.dtype)


def _scale_kernel(x_ref, inv_ref, o_ref):
    """y = x * inv_sigma, inv_sigma broadcast over the last (lane) axis."""
    x = x_ref[...].astype(jnp.float32)
    inv = inv_ref[...].astype(jnp.float32)
    o_ref[...] = (x * inv).astype(o_ref.dtype)


# ----------------------------------------------------------------------------
# Tiling helper
# ----------------------------------------------------------------------------
def _choose_row_tile(R: int, T: int, itemsize: int,
                     target_block_bytes: int = 2 << 20) -> int:
    """Rows per block: ~2 MiB per block, multiple of 8, or full R if small.

    Blocks are double-buffered for input and output, so the working set is
    roughly 4x the block size -> ~8-10 MiB, safe under v5e's 16 MiB default
    scoped VMEM and v7x's 64 MiB physical VMEM."""
    rows = max(8, target_block_bytes // max(1, T * itemsize))
    rows -= rows % 8
    rows = max(8, rows)
    if rows >= R:
        return R          # full extent is always a legal block dim
    return rows           # multiple of 8; ragged last tile handled by Pallas


# ----------------------------------------------------------------------------
# Pallas wrappers
# ----------------------------------------------------------------------------
def _rms_norm_pallas(x2d: jax.Array) -> jax.Array:
    R, T = x2d.shape
    TR = _choose_row_tile(R, T, x2d.dtype.itemsize)
    return pl.pallas_call(
        _rms_norm_kernel,
        out_shape=jax.ShapeDtypeStruct((R, T), x2d.dtype),
        grid=(pl.cdiv(R, TR),),
        in_specs=[pl.BlockSpec((TR, T), lambda i: (i, 0))],
        out_specs=pl.BlockSpec((TR, T), lambda i: (i, 0)),
        compiler_params=pltpu.CompilerParams(
            dimension_semantics=("parallel",)),
    )(x2d)


def _scale_pallas(x2d: jax.Array, inv2d: jax.Array) -> jax.Array:
    R, T = x2d.shape
    _, Ts = inv2d.shape       # Ts is 1 (per-row scale) or T (per-element scale)
    TR = _choose_row_tile(R, T, x2d.dtype.itemsize)
    return pl.pallas_call(
        _scale_kernel,
        out_shape=jax.ShapeDtypeStruct((R, T), x2d.dtype),
        grid=(pl.cdiv(R, TR),),
        in_specs=[
            pl.BlockSpec((TR, T), lambda i: (i, 0)),
            pl.BlockSpec((TR, Ts), lambda i: (i, 0)),
        ],
        out_specs=pl.BlockSpec((TR, T), lambda i: (i, 0)),
        compiler_params=pltpu.CompilerParams(
            dimension_semantics=("parallel",)),
    )(x2d, inv2d)


# ----------------------------------------------------------------------------
# Module-equivalent wrapper
# ----------------------------------------------------------------------------
class NormalizationLayer:
    """Divide certain dimension by specified values (Pallas-backed forward)."""

    def __init__(self, dim: int, sigma, on_the_fly: bool) -> None:
        self.dim = dim
        if sigma is not None and (bool(jnp.any(sigma <= 0)) or bool(jnp.any(jnp.isnan(sigma)))):
            raise ValueError("Sigma must contain only positive values.")
        self.sigma = sigma
        # Precompute reciprocal once (sigma is a fixed buffer) -> kernel is a
        # pure VPU multiply stream with zero per-call EUP work.
        self.inv_sigma = None if sigma is None else (
            1.0 / sigma.astype(jnp.float32)).astype(sigma.dtype)
        self.on_the_fly = on_the_fly

    def __call__(self, x: jax.Array, bs=None) -> jax.Array:
        if self.on_the_fly:
            orig_shape = x.shape
            y2d = _rms_norm_pallas(x.reshape(-1, x.shape[-1]))
            return y2d.reshape(orig_shape)

        if self.sigma is None:
            return x

        # Glue: expand inv_sigma with trailing singleton dims (matches torch
        # `self.sigma[..., *(None,)*(x.ndim-1-self.dim)]`), optional batch select.
        inv = self.inv_sigma
        inv = inv.reshape(inv.shape + (1,) * (x.ndim - 1 - self.dim))
        if bs is not None and self.sigma.shape[0] > 1:
            inv = inv[bs, ...]

        # Broadcast over leading dims only; keep last dim as 1 (per-row scale)
        # or T (when self.dim is the last axis), so HBM traffic stays minimal.
        inv_full = jnp.broadcast_to(inv, x.shape[:-1] + (inv.shape[-1],))

        orig_shape = x.shape
        x2d = x.reshape(-1, x.shape[-1])
        inv2d = inv_full.reshape(-1, inv_full.shape[-1])
        y2d = _scale_pallas(x2d, inv2d)
        return y2d.reshape(orig_shape)


# ----------------------------------------------------------------------------
# Pure-JAX references for verification
# ----------------------------------------------------------------------------
def _ref_on_the_fly(x):
    sigma = jnp.sqrt(jnp.mean(jnp.abs(x) ** 2.0, axis=-1, keepdims=True))
    return x / sigma


def _ref_buffer(x, sigma, dim, bs=None):
    s = sigma.reshape(sigma.shape + (1,) * (x.ndim - 1 - dim))
    if bs is not None and sigma.shape[0] > 1:
        s = s[bs, ...]
    return x / s


if __name__ == "__main__":
    key = jax.random.PRNGKey(0)
    k_x, k_s = jax.random.split(key)

    B, C, T = 2, 4, 128
    x = jax.random.normal(k_x, (B, C, T), dtype=jnp.float32)

    # --- mode 1: on_the_fly RMS normalization over last axis ----------------
    layer_fly = NormalizationLayer(dim=1, sigma=None, on_the_fly=True)
    y_fly = jax.block_until_ready(layer_fly(x))
    ref_fly = _ref_on_the_fly(x)
    assert y_fly.shape == x.shape and y_fly.dtype == x.dtype
    assert bool(jnp.allclose(y_fly, ref_fly, rtol=1e-5, atol=1e-5))

    # --- mode 2: divide by registered sigma buffer (dim=1, sigma (B, C)) ----
    sigma = jax.random.uniform(k_s, (B, C), dtype=jnp.float32, minval=0.5, maxval=2.0)
    layer_buf = NormalizationLayer(dim=1, sigma=sigma, on_the_fly=False)
    y_buf = jax.block_until_ready(layer_buf(x))
    ref_buf = _ref_buffer(x, sigma, dim=1)
    assert y_buf.shape == x.shape and y_buf.dtype == x.dtype
    assert bool(jnp.allclose(y_buf, ref_buf, rtol=1e-5, atol=1e-5))

    # --- mode 2 with batch-select indices `bs` -------------------------------
    bs = jnp.array([1, 0], dtype=jnp.int32)
    y_bs = jax.block_until_ready(layer_buf(x, bs=bs))
    ref_bs = _ref_buffer(x, sigma, dim=1, bs=bs)
    assert bool(jnp.allclose(y_bs, ref_bs, rtol=1e-5, atol=1e-5))

    # --- mode 3: sigma is None -> identity -----------------------------------
    layer_id = NormalizationLayer(dim=1, sigma=None, on_the_fly=False)
    y_id = jax.block_until_ready(layer_id(x))
    assert bool(jnp.array_equal(y_id, x))

    print("KERNEL_OK")
</pallas_src>

<mosaic_0001>
module attributes {stable_mosaic.version = 11 : i64} {
  func.func @_rms_norm_kernel(%arg0: i32, %arg1: memref<8x128xf32, #tpu.memory_space<vmem>>, %arg2: memref<8x128xf32, #tpu.memory_space<vmem>>) attributes {dimension_semantics = [#tpu.dimension_semantics<parallel>], iteration_bounds = array<i64: 1>, scalar_prefetch = 0 : i64, scratch_operands = 0 : i64, tpu.core_type = #tpu.core_type<tc>, window_params = [{transform_indices = @transform_0, window_bounds = array<i64: 8, 128>}, {transform_indices = @transform_1, window_bounds = array<i64: 8, 128>}]} {
    %c0 = arith.constant 0 : index
    %c0_0 = arith.constant 0 : index
    %0 = vector.load %arg1[%c0, %c0_0] : memref<8x128xf32, #tpu.memory_space<vmem>>, vector<8x128xf32>
    %1 = arith.mulf %0, %0 : vector<8x128xf32>
    %cst = arith.constant dense<0.000000e+00> : vector<8xf32>
    %2 = vector.multi_reduction <add>, %1, %cst [1] : vector<8x128xf32> to vector<8xf32>
    %3 = vector.shape_cast %2 : vector<8xf32> to vector<8x1xf32>
    %cst_1 = arith.constant 1.280000e+02 : f32
    %4 = vector.broadcast %cst_1 : f32 to vector<8x1xf32>
    %5 = arith.divf %3, %4 : vector<8x1xf32>
    %6 = math.sqrt %5 : vector<8x1xf32>
    %cst_2 = arith.constant 1.000000e+00 : f32
    %7 = vector.broadcast %cst_2 : f32 to vector<8x1xf32>
    %8 = arith.divf %7, %6 : vector<8x1xf32>
    %9 = vector.broadcast %8 : vector<8x1xf32> to vector<8x128xf32>
    %10 = arith.mulf %0, %9 : vector<8x128xf32>
    %c0_3 = arith.constant 0 : index
    %c0_4 = arith.constant 0 : index
    %11 = vector.load %arg2[%c0_3, %c0_4] : memref<8x128xf32, #tpu.memory_space<vmem>>, vector<8x128xf32>
    tpu.vector_store %arg2[%c0_3, %c0_4], %10 {strides = array<i32>} : memref<8x128xf32, #tpu.memory_space<vmem>>, vector<8x128xf32>,
    return
  }
  func.func @transform_0(%arg0: i32) -> (i32, i32) {
    %c0_i32 = arith.constant 0 : i32
    %c0_i32_0 = arith.constant 0 : i32
    return %arg0, %c0_i32 : i32, i32
  }
  func.func @transform_1(%arg0: i32) -> (i32, i32) {
    %c0_i32 = arith.constant 0 : i32
    %c0_i32_0 = arith.constant 0 : i32
    return %arg0, %c0_i32 : i32, i32
  }
}

</mosaic_0001>

<bundles_post_ra>
// kernel: tpu_custom_call.1
= control target key start
LH: loop header
LB: loop body
LE: loop exit
PB: predicated region body
PF: predicated region fallthrough
CT: control target
= control target key end

     0   :  { %6 = vsyncpa [#allocation3], 0  ;;  %s143_s0 = inlined_call_operand.hbm [shape: f32[8,128], index: 0, kind: input, shape index: {}]   ;;  %s144_s1 = inlined_call_operand.hbm [shape: f32[8,128], index: 1, kind: output, shape index: {}]  }
   0x1   :  { %7 = vsyncpa [#allocation4], 0  ;;  %s107_s6 = smov [#allocation2]   ;;  %s59_s10 = scalar_lea.hbm %s143_s0, 128 }
   0x2   :  { %s14_s7 = sshll.u32 %s107_s6, 4  ;;  %p60_p0 = scmp.ne.s32.totalorder %s143_s0, %s59_s10  ;;  %s15_s7 = int_to_ptr.vmem [resolvable:$true] %s14_s7 }
   0x3   :  { %p63_p1 = scmp.lt.u32.totalorder %s59_s10, %s143_s0 }
   0x5   :  { %p65_p2 = pnand %p63_p1, %p60_p0 }
   0x7   :  { %68 = shalt.err (!%p65_p2)
}
   0x8   :  { %s69_s15 = scalar_lea.vmem %s15_s7, 128  ;;  %p74_p4 = scmp.lt.s32.totalorder %s15_s7, %s15_s7 }
   0x9   :  { %p70_p3 = scmp.ne.s32.totalorder %s15_s7, %s69_s15  ;;  %p75_p5 = scmp.lt.s32.totalorder %s69_s15, %s69_s15 }
   0xb   :  { %p76_p6 = por %p75_p5, %p74_p4 }
   0xd   :  { %p77_p7 = pnand %p76_p6, %p70_p3 }
   0xf   :  { %80 = shalt.err (!%p77_p7)
}
  0x10   :  { %17 = dma.hbm_to_vmem [thread:$0]  %s143_s0, 128, %s15_s7, [#allocation3]  }
  0x11   :  { %103 = dma.done.wait [#allocation3], 128  }
  0x12   :  { %104 = vsyncadd [#allocation3], 4294967168  ;;  %v21_v0 = vld [vmem:[#allocation2] sm:$0xff]  ;;  %s108_s18 = smov [#allocation5]  }
  0x13   :  { %v22_v1 = vmul.f32 %v21_v0, %v21_v0  ;;  %s44_s19 = sshll.u32 %s108_s18, 4  ;;  %s45_s19 = int_to_ptr.vmem [resolvable:$true] %s44_s19 }
  0x14   :  { %s81_s0 = scalar_lea.vmem %s45_s19, 128  ;;  %p86_p9 = scmp.lt.s32.totalorder %s45_s19, %s45_s19 }
  0x15   :  { %23 = vadd.xlane.f32.xlu0 %v22_v1  ;;  %p82_p8 = scmp.ne.s32.totalorder %s45_s19, %s81_s0  ;;  %p87_p10 = scmp.lt.s32.totalorder %s81_s0, %s81_s0 }
  0x17   :  { %p88_p11 = por %p87_p10, %p86_p9 }
  0x19   :  { %p89_p12 = pnand %p88_p11, %p82_p8 }
  0xa2   :  { %v24_v2 = vpop.xlane.xlu0 %23 }
  0xa3   :  { %v26_v3 = vmul.f32 0.0078125, %v24_v2 }
  0xa5   :  { %55 = vrsqrt.f32 %v26_v3  ;;  %vm29_vm0 = vcmp.eq.f32.partialorder %v26_v3, inf  ;;  %v32_v6 = vand.u32 2147483648, %v26_v3  ;;  %vm31_vm1 = vcmp.eq.f32.partialorder %v26_v3, 0.0 }
  0xaf   :  { %v56_v4 = vpop.eup %55 }
  0xb0   :  { %v28_v5 = vmul.f32 %v56_v4, %v26_v3 }
  0xb2   :  { %v30_v7 = vsel %vm29_vm0, %v26_v3, %v28_v5 }
  0xb3   :  { %v33_v8 = vsel %vm31_vm1, %v32_v6, %v30_v7 }
  0xb4   :  { %57 = vrcp.f32 %v33_v8 }
  0xbe   :  { %v58_v9 = vpop.eup %57 }
  0xbf   :  { %v36_v10 = vmul.f32 %v58_v9, %v21_v0 }
  0xc1   :  { %37 = vst [vmem:[#allocation5] sm:$0xff] %v36_v10 }
  0xc2   :  { %92 = shalt.err (!%p89_p12)
}
  0xc3   :  { %s93_s22 = scalar_lea.hbm %s144_s1, 128 }
  0xc4   :  { %p94_p13 = scmp.ne.s32.totalorder %s144_s1, %s93_s22  ;;  %p97_p0 = scmp.lt.u32.totalorder %s93_s22, %s144_s1 }
  0xc6   :  { %p99_p1 = pnand %p97_p0, %p94_p13 }
  0xc8   :  { %102 = shalt.err (!%p99_p1)
}
  0xc9   :  { %47 = dma.vmem_to_hbm [thread:$0]  %s45_s19, 128, %s144_s1, [#allocation4]  }
  0xca   :  { %105 = dma.done.wait [#allocation4], 128  }
  0xcb   :  { %106 = vsyncadd [#allocation4], 4294967168 }
  0xcc   :  { %51 = vsyncpa [#allocation3], 1 }
  0xcd   :  { %52 = vsyncpa [#allocation4], 1 }

</bundles_post_ra>
